<compile_context>
chip_gen: v6e
topology: v6e:2x2x1
jax: 0.10.0
libtpu: 0.0.40
codegen_flags: <defaults>
</compile_context>

<pallas_src>
import functools

import numpy as np
import jax
import jax.numpy as jnp
from jax.experimental import pallas as pl
from jax.experimental.pallas import tpu as pltpu

ALPHA = 0.9
GAMMA = 2.0
BETA = 0.9

_LANE = 128


def _round_up(v, m):
    return ((v + m - 1) // m) * m


def _focal_partials_kernel(n_rows, preds_ref, targets_ref, w_ref,
                           num_ref, den_ref):
    """One grid step: weighted-NLL partial sums over tile_n samples.

    preds_ref   : (C, tile_n) logits, native dtype (lane = sample index)
    targets_ref : (1, tile_n) int32 class ids
    w_ref       : (C, 1) f32 class weights
    num_ref     : (1, 1, 1) f32  sum_i w[t_i] * (-log p_i[t_i])  (this tile)
    den_ref     : (1, 1, 1) f32  sum_i w[t_i]                    (this tile)
    """
    i = pl.program_id(0)
    tile_n = preds_ref.shape[1]

    # f32 math in-kernel (mandatory on v5e: no bf16 VPU/EUP); inputs stream bf16.
    x = preds_ref[...].astype(jnp.float32)               # (C, tile_n)
    t = targets_ref[...]                                  # (1, tile_n) int32

    # log-sum-exp over the class (sublane) axis; exp runs only on real classes.
    m = jnp.max(x, axis=0, keepdims=True)                 # (1, tile_n)
    lse = m + jnp.log(jnp.sum(jnp.exp(x - m), axis=0, keepdims=True))

    # Pick the target logit and its class weight via a sublane one-hot;
    # no full (C, tile_n) logp / -w*logp is ever materialized.
    cls_ids = jax.lax.broadcasted_iota(jnp.int32, x.shape, 0)
    onehot = cls_ids == t                                  # (C, tile_n)
    picked_x = jnp.sum(jnp.where(onehot, x, 0.0), axis=0, keepdims=True)
    picked_w = jnp.sum(jnp.where(onehot, w_ref[...].astype(jnp.float32), 0.0),
                       axis=0, keepdims=True)              # (1, tile_n)

    # Mask padded columns of the last tile (global sample index >= n_rows);
    # the select also keeps NaN/inf garbage from OOB padding out of the sums.
    col = jax.lax.broadcasted_iota(jnp.int32, (1, tile_n), 1) + i * tile_n
    valid = col < n_rows
    num_c = jnp.where(valid, picked_w * (lse - picked_x), 0.0)  # w_t * (-logp_t)
    den_c = jnp.where(valid, picked_w, 0.0)

    # Per-tile scalar partials -> each grid step owns its output block, so the
    # grid axis stays fully parallel (v7x megacore) with no shared scratch.
    num_ref[...] = jnp.sum(num_c).reshape(1, 1, 1)
    den_ref[...] = jnp.sum(den_c).reshape(1, 1, 1)


def _vmem_budget_bytes():
    # Per-generation budget for the per-step working set; conservative enough
    # that the same tile choice is also legal on v7x's 64 MiB/TC VMEM.
    try:
        cap = int(pltpu.get_tpu_info().vmem_capacity_bytes)
    except Exception:  # info unavailable -> assume the smallest (v7x) VMEM
        cap = 64 << 20
    return int(min(cap // 2, 40 << 20))


def _pick_tile_n(n_rows, n_classes, itemsize, budget):
    # VMEM bytes per sample column per grid step:
    #   2x double-buffered inputs (logits column + int32 target) plus ~6 live
    #   f32 (C, tile) intermediates (x_f32, exp, iota/onehot selects, ...).
    per_col = 2 * (n_classes * itemsize + 4) + 6 * n_classes * 4
    tile = budget // per_col
    # >= ~1 MB of useful HBM per step once lane-dense; the 64K cap bounds the
    # temporary footprint on the smallest (v7x) VMEM.
    tile = max(_LANE, min(tile, 64 * 1024))
    tile -= tile % _LANE
    if n_rows >= _LANE:
        tile = min(tile, (n_rows // _LANE) * _LANE)
    return tile


def focal_loss(preds, targets, class_weights, *, alpha=ALPHA, gamma=GAMMA,
               tile_n=None):
    """preds: (N, C) logits (any float dtype), targets: (N,) int class ids,
    class_weights: (C,) f32.  Returns the scalar focal loss."""
    n_rows, n_classes = preds.shape
    itemsize = jnp.dtype(preds.dtype).itemsize
    budget = _vmem_budget_bytes()
    if tile_n is None:
        tile_n = _pick_tile_n(n_rows, n_classes, itemsize, budget)
    assert tile_n % _LANE == 0 and tile_n > 0
    num_tiles = pl.cdiv(n_rows, tile_n)

    # Lane-dense layout: samples on the lane axis.  (A producer should emit
    # logits as (C, N) directly; this transpose is wrapper-side plumbing.)
    preds_t = preds.T                                         # (C, N), native dtype
    targets2 = targets.reshape(1, n_rows).astype(jnp.int32)   # (1, N), contiguous DMA
    w2 = class_weights.reshape(n_classes, 1).astype(jnp.float32)

    # Headroom above the working set for Mosaic internals; < v7x 64 MiB/TC.
    vmem_limit = int(min(budget + (8 << 20), 48 << 20))

    kernel = functools.partial(_focal_partials_kernel, int(n_rows))
    num_part, den_part = pl.pallas_call(
        kernel,
        out_shape=(jax.ShapeDtypeStruct((num_tiles, 1, 1), jnp.float32),
                   jax.ShapeDtypeStruct((num_tiles, 1, 1), jnp.float32)),
        grid_spec=pltpu.PrefetchScalarGridSpec(
            num_scalar_prefetch=0,
            grid=(num_tiles,),
            in_specs=[
                pl.BlockSpec((n_classes, tile_n), lambda i: (0, i)),
                pl.BlockSpec((1, tile_n), lambda i: (0, i)),
                pl.BlockSpec((n_classes, 1), lambda i: (0, 0)),
            ],
            out_specs=[
                pl.BlockSpec((1, 1, 1), lambda i: (i, 0, 0)),
                pl.BlockSpec((1, 1, 1), lambda i: (i, 0, 0)),
            ],
        ),
        compiler_params=pltpu.CompilerParams(
            dimension_semantics=("parallel",),  # v7x megacore splits N over 2 TCs
            vmem_limit_bytes=vmem_limit,
        ),
    )(preds_t, targets2, w2)

    # Tiny finalize in the wrapper (keeps the kernel grid axis parallel).
    num = jnp.sum(num_part)
    den = jnp.sum(den_part)   # no den==0 guard: matches the PyTorch reference
    ce = num / den            # weighted-mean cross entropy
    pt = jnp.exp(-ce)
    return alpha * (1.0 - pt) ** gamma * ce


def focal_loss_ref(preds, targets, class_weights, alpha=ALPHA, gamma=GAMMA):
    # pure-JAX reference for a correctness check
    logp = jax.nn.log_softmax(preds.astype(jnp.float32), axis=-1)
    picked = jnp.take_along_axis(logp, targets[:, None].astype(jnp.int32),
                                 axis=-1)[:, 0]
    wt = class_weights[targets]
    ce = jnp.sum(-wt * picked) / jnp.sum(wt)
    pt = jnp.exp(-ce)
    return alpha * (1.0 - pt) ** gamma * ce


if __name__ == "__main__":
    # deterministic "class frequency" init, mirroring FocalLoss.__init__
    counts = np.array([50.0, 20.0, 30.0, 10.0, 40.0, 25.0, 15.0, 60.0])
    betas = np.ones(counts.shape[0]) * BETA
    class_weights = jnp.asarray((1.0 - betas) / (1.0 - betas ** counts),
                                jnp.float32)

    N, C = 300, 8  # N not a multiple of the tile -> exercises last-tile masking
    key = jax.random.PRNGKey(0)
    k1, k2 = jax.random.split(key)
    # logits in their native (bf16) dtype -- no wrapper-side f32 upcast
    preds = jax.random.normal(k1, (N, C), jnp.float32).astype(jnp.bfloat16)
    targets = jax.random.randint(k2, (N,), 0, C, dtype=jnp.int32)

    ref = focal_loss_ref(preds, targets, class_weights)

    # multi-tile path: 3 grid steps, partial last tile
    loss_tiled = focal_loss(preds, targets, class_weights, tile_n=128)
    # auto-tiled path: tile chosen from the VMEM budget (2 steps here)
    loss_auto = focal_loss(preds, targets, class_weights)
    jax.block_until_ready((loss_tiled, loss_auto))

    assert np.allclose(np.asarray(loss_tiled), np.asarray(ref),
                       rtol=1e-5, atol=1e-5), (loss_tiled, ref)
    assert np.allclose(np.asarray(loss_auto), np.asarray(ref),
                       rtol=1e-5, atol=1e-5), (loss_auto, ref)

    print("KERNEL_OK")
</pallas_src>

<mosaic_0001>
module attributes {stable_mosaic.version = 11 : i64} {
  func.func @_focal_partials_kernel(%arg0: i32, %arg1: memref<8x128xbf16, #tpu.memory_space<vmem>>, %arg2: memref<1x128xi32, #tpu.memory_space<vmem>>, %arg3: memref<8x1xf32, #tpu.memory_space<vmem>>, %arg4: memref<1x1x1xf32, #tpu.memory_space<vmem>>, %arg5: memref<1x1x1xf32, #tpu.memory_space<vmem>>) attributes {dimension_semantics = [#tpu.dimension_semantics<parallel>], iteration_bounds = array<i64: 3>, scalar_prefetch = 0 : i64, scratch_operands = 0 : i64, tpu.core_type = #tpu.core_type<tc>, window_params = [{transform_indices = @transform_0, window_bounds = array<i64: 8, 128>}, {transform_indices = @transform_1, window_bounds = array<i64: 1, 128>}, {pipeline_mode = #tpu.pipeline_mode<synchronous>, transform_indices = @transform_2, window_bounds = array<i64: 8, 1>}, {transform_indices = @transform_3, window_bounds = array<i64: 1, 1, 1>}, {transform_indices = @transform_4, window_bounds = array<i64: 1, 1, 1>}]} {
    %c0 = arith.constant 0 : index
    %c0_0 = arith.constant 0 : index
    %0 = vector.load %arg1[%c0, %c0_0] : memref<8x128xbf16, #tpu.memory_space<vmem>>, vector<8x128xbf16>
    %1 = arith.extf %0 : vector<8x128xbf16> to vector<8x128xf32>
    %c0_1 = arith.constant 0 : index
    %c0_2 = arith.constant 0 : index
    %2 = vector.load %arg2[%c0_1, %c0_2] : memref<1x128xi32, #tpu.memory_space<vmem>>, vector<1x128xi32>
    %cst = arith.constant dense<0xFF800000> : vector<128xf32>
    %3 = vector.multi_reduction <maximumf>, %1, %cst [0] : vector<8x128xf32> to vector<128xf32>
    %4 = vector.shape_cast %3 : vector<128xf32> to vector<1x128xf32>
    %5 = vector.broadcast %4 : vector<1x128xf32> to vector<8x128xf32>
    %6 = arith.subf %1, %5 : vector<8x128xf32>
    %7 = math.exp %6 : vector<8x128xf32>
    %cst_3 = arith.constant dense<0.000000e+00> : vector<128xf32>
    %8 = vector.multi_reduction <add>, %7, %cst_3 [0] : vector<8x128xf32> to vector<128xf32>
    %9 = vector.shape_cast %8 : vector<128xf32> to vector<1x128xf32>
    %10 = math.log %9 : vector<1x128xf32>
    %11 = arith.addf %4, %10 : vector<1x128xf32>
    %12 = tpu.iota {dimensions = array<i32: 0>} : vector<8x128xi32>
    %13 = vector.broadcast %2 : vector<1x128xi32> to vector<8x128xi32>
    %14 = arith.cmpi eq, %12, %13 : vector<8x128xi32>
    %cst_4 = arith.constant 0.000000e+00 : f32
    %15 = vector.broadcast %cst_4 : f32 to vector<8x128xf32>
    %16 = arith.select %14, %1, %15 : vector<8x128xi1>, vector<8x128xf32>
    %cst_5 = arith.constant dense<0.000000e+00> : vector<128xf32>
    %17 = vector.multi_reduction <add>, %16, %cst_5 [0] : vector<8x128xf32> to vector<128xf32>
    %18 = vector.shape_cast %17 : vector<128xf32> to vector<1x128xf32>
    %c0_6 = arith.constant 0 : index
    %c0_7 = arith.constant 0 : index
    %19 = vector.load %arg3[%c0_6, %c0_7] : memref<8x1xf32, #tpu.memory_space<vmem>>, vector<8x1xf32>
    %cst_8 = arith.constant 0.000000e+00 : f32
    %20 = vector.shape_cast %19 : vector<8x1xf32> to vector<8x1xf32>
    %21 = vector.broadcast %20 : vector<8x1xf32> to vector<8x128xf32>
    %22 = vector.broadcast %cst_8 : f32 to vector<8x128xf32>
    %23 = arith.select %14, %21, %22 : vector<8x128xi1>, vector<8x128xf32>
    %cst_9 = arith.constant dense<0.000000e+00> : vector<128xf32>
    %24 = vector.multi_reduction <add>, %23, %cst_9 [0] : vector<8x128xf32> to vector<128xf32>
    %25 = vector.shape_cast %24 : vector<128xf32> to vector<1x128xf32>
    %26 = tpu.iota {dimensions = array<i32: 1>} : vector<1x128xi32>
    %c128_i32 = arith.constant 128 : i32
    %27 = arith.muli %arg0, %c128_i32 : i32
    %28 = vector.broadcast %27 : i32 to vector<1x128xi32>
    %29 = arith.addi %26, %28 : vector<1x128xi32>
    %c300_i32 = arith.constant 300 : i32
    %30 = vector.broadcast %c300_i32 : i32 to vector<1x128xi32>
    %31 = arith.cmpi slt, %29, %30 : vector<1x128xi32>
    %32 = arith.subf %11, %18 : vector<1x128xf32>
    %33 = arith.mulf %25, %32 : vector<1x128xf32>
    %cst_10 = arith.constant 0.000000e+00 : f32
    %34 = vector.broadcast %cst_10 : f32 to vector<1x128xf32>
    %35 = arith.select %31, %33, %34 : vector<1x128xi1>, vector<1x128xf32>
    %cst_11 = arith.constant 0.000000e+00 : f32
    %36 = vector.broadcast %cst_11 : f32 to vector<1x128xf32>
    %37 = arith.select %31, %25, %36 : vector<1x128xi1>, vector<1x128xf32>
    %38 = vector.shape_cast %35 : vector<1x128xf32> to vector<1x1x128xf32>
    %cst_12 = arith.constant dense<0.000000e+00> : vector<1xf32>
    %39 = vector.multi_reduction <add>, %38, %cst_12 [1, 2] : vector<1x1x128xf32> to vector<1xf32>
    %40 = vector.shape_cast %39 : vector<1xf32> to vector<1x1x1xf32>
    %41 = vector.extract %40[0, 0, 0] : f32 from vector<1x1x1xf32>
    %42 = vector.broadcast %41 : f32 to vector<1x1x1xf32>
    %c0_13 = arith.constant 0 : index
    %c0_14 = arith.constant 0 : index
    %c0_15 = arith.constant 0 : index
    %43 = vector.load %arg4[%c0_13, %c0_14, %c0_15] : memref<1x1x1xf32, #tpu.memory_space<vmem>>, vector<1x1x1xf32>
    tpu.vector_store %arg4[%c0_13, %c0_14, %c0_15], %42 {strides = array<i32>} : memref<1x1x1xf32, #tpu.memory_space<vmem>>, vector<1x1x1xf32>,
    %44 = vector.shape_cast %37 : vector<1x128xf32> to vector<1x1x128xf32>
    %cst_16 = arith.constant dense<0.000000e+00> : vector<1xf32>
    %45 = vector.multi_reduction <add>, %44, %cst_16 [1, 2] : vector<1x1x128xf32> to vector<1xf32>
    %46 = vector.shape_cast %45 : vector<1xf32> to vector<1x1x1xf32>
    %47 = vector.extract %46[0, 0, 0] : f32 from vector<1x1x1xf32>
    %48 = vector.broadcast %47 : f32 to vector<1x1x1xf32>
    %c0_17 = arith.constant 0 : index
    %c0_18 = arith.constant 0 : index
    %c0_19 = arith.constant 0 : index
    %49 = vector.load %arg5[%c0_17, %c0_18, %c0_19] : memref<1x1x1xf32, #tpu.memory_space<vmem>>, vector<1x1x1xf32>
    tpu.vector_store %arg5[%c0_17, %c0_18, %c0_19], %48 {strides = array<i32>} : memref<1x1x1xf32, #tpu.memory_space<vmem>>, vector<1x1x1xf32>,
    return
  }
  func.func @transform_0(%arg0: i32) -> (i32, i32) {
    %c0_i32 = arith.constant 0 : i32
    %c0_i32_0 = arith.constant 0 : i32
    return %c0_i32, %arg0 : i32, i32
  }
  func.func @transform_1(%arg0: i32) -> (i32, i32) {
    %c0_i32 = arith.constant 0 : i32
    %c0_i32_0 = arith.constant 0 : i32
    return %c0_i32, %arg0 : i32, i32
  }
  func.func @transform_2(%arg0: i32) -> (i32, i32) {
    %c0_i32 = arith.constant 0 : i32
    %c0_i32_0 = arith.constant 0 : i32
    %c0_i32_1 = arith.constant 0 : i32
    return %c0_i32, %c0_i32_0 : i32, i32
  }
  func.func @transform_3(%arg0: i32) -> (i32, i32, i32) {
    %c0_i32 = arith.constant 0 : i32
    %c0_i32_0 = arith.constant 0 : i32
    %c0_i32_1 = arith.constant 0 : i32
    return %arg0, %c0_i32, %c0_i32_0 : i32, i32, i32
  }
  func.func @transform_4(%arg0: i32) -> (i32, i32, i32) {
    %c0_i32 = arith.constant 0 : i32
    %c0_i32_0 = arith.constant 0 : i32
    %c0_i32_1 = arith.constant 0 : i32
    return %arg0, %c0_i32, %c0_i32_0 : i32, i32, i32
  }
}

</mosaic_0001>

<bundles_post_ra>
// kernel: tpu_custom_call.1
= control target key start
LH: loop header
LB: loop body
LE: loop exit
PB: predicated region body
PF: predicated region fallthrough
CT: control target
= control target key end

     0   :  { %10 = vsyncpa [#allocation3], 0  ;;  %s677_s0 = inlined_call_operand.hbm [shape: bf16[8,300], index: 0, kind: input, shape index: {}]   ;;  %s678_s1 = inlined_call_operand.vmem [shape: s32[1,300], index: 1, kind: input, shape index: {}]   ;;  %s679_s2 = inlined_call_operand.vmem [shape: f32[8,1], index: 2, kind: input, shape index: {}]   ;;  %s680_s3 = inlined_call_operand.vmem [shape: f32[3,1,1], index: 3, kind: output, shape index: {0}]   ;;  %s681_s4 = inlined_call_operand.vmem [shape: f32[3,1,1], index: 4, kind: output, shape index: {1}]  }
   0x1   :  { %12 = vsyncpa [#allocation3 + $0x1], 0  ;;  %s562_s15 = smov 0   ;;  %s564_s16 = smov 0  }
   0x2   :  { %s566_s17 = smov 0   ;;  %s568_s18 = smov 0  }
   0x3 LB: > { %s581_s19 = sadd.s32 4294967295, %s533_s18   ;;  %s584_s20 = sadd.s32 1, %s533_s18   ;;  %s533_s18 = sphi %s568_s18, %s691_s18   ;;  %s529_s17 = sphi %s566_s17, %s690_s17   ;;  %s525_s16 = sphi %s564_s16, %s689_s16   ;;  %s521_s15 = sphi %s562_s15, %s688_s15  }
   0x4   : > { %s22_s21 = ssub.s32 %s533_s18, %s584_s20  ;;  %s25_s22 = sadd.s32 1, %s529_s17 }
   0x5   : > { %p23_p0 = scmp.eq.s32.totalorder %s22_s21, 0  ;;  %p32_p1 = scmp.ne.s32.totalorder %s529_s17, %s525_s16 }
   0x6   : > { %p33_p2 = scmp.eq.s32.totalorder %s533_s18, 0  ;;  %p38_p3 = scmp.ne.s32.totalorder %s525_s16, %s521_s15 }
   0x7   : > { %s594_s23 = scalar_select %p23_p0, %s529_s17, %s25_s22  }
   0x8   : > { %p34_p4 = por %p33_p2, %p32_p1  ;;  %p39_p5 = scmp.eq.s32.totalorder %s581_s19, 0 }
   0x9   : > { %p432_p6 = scmp.lt.s32.totalorder %s533_s18, 3  ;;  %s164_s25 = sand.u32 1, %s529_s17  }
   0xa   : > { %p598_p7 = por %p39_p5, %p38_p3  ;;  %s414_s26 = sshll.u32 %s164_s25, 2 }
   0xb   : > { %s415_s27 = sshll.u32 %s533_s18, 6  ;;  %s168_s5 = scalar_lea.vmem [#allocation2], %s414_s26 }
   0xc   : > { %s683_s24 = scalar_select %p598_p7, 1, 0 }
   0xd   : > { %s607_s30 = scalar_lea.hbm %s677_s0, %s415_s27  ;;  %s175_s6 = sshll.u32 %s168_s5, 4  ;;  %s609_s6 = int_to_ptr.vmem [resolvable:$true] %s175_s6 }
   0xe   : > { %p611_p8 = pnand %p432_p6, %p34_p4  ;;  %s165_s8 = scalar_lea.sflag [#allocation3], %s164_s25 }
   0xf   : > { %s471_s9 = scalar_lea.hbm %s607_s30, 64  ;;  %s476_s12 = scalar_lea.hbm %s677_s0, 192 }
  0x10   : > { %p472_p11 = scmp.ne.s32.totalorder %s607_s30, %s471_s9  ;;  %p473_p12 = pneg %p611_p8 }
  0x11   : > { %p477_p1 = scmp.lt.s32.totalorder %s607_s30, %s677_s0  ;;  %p478_p2 = scmp.lt.s32.totalorder %s476_s12, %s471_s9 }
  0x12   : > { %p474_p13 = pnand %p473_p12, %p472_p11 }
  0x13   : > { %p479_p3 = por %p478_p2, %p477_p1 }
  0x14   : > { %p475_p0 = pneg %p474_p13 }
  0x16   : > { %p480_p4 = pnand %p479_p3, %p475_p0 }
  0x18   : > { %483 = shalt.err (!%p480_p4)
}
  0x19   : > { %s484_s15 = scalar_lea.vmem %s609_s6, 64  ;;  %s535_s21 = smov [#allocation2]  }
  0x1a   : > { %p485_p5 = scmp.ne.s32.totalorder %s609_s6, %s484_s15  ;;  %s489_s22 = sshll.u32 %s535_s21, 4  ;;  %s490_s22 = int_to_ptr.vmem [resolvable:$false] %s489_s22 }
  0x1b   : > { %s491_s25 = scalar_lea.vmem %s490_s22, 128  ;;  %p492_p13 = scmp.lt.s32.totalorder %s609_s6, %s490_s22 }
  0x1c   : > { %p487_p6 = pnand %p485_p5, %p473_p12  ;;  %p493_p9 = scmp.lt.s32.totalorder %s491_s25, %s484_s15 }
  0x1e   : > { %p488_p11 = pneg %p487_p6  ;;  %p494_p10 = por %p493_p9, %p492_p13 }
  0x20   : > { %p495_p7 = pnand %p494_p10, %p488_p11 }
  0x22   : > { %498 = shalt.err (!%p495_p7)
}
  0x23   : > { %431 = dma.hbm_to_vmem [thread:$0]  (!%p611_p8), %s607_s30, 64, %s609_s6, %s165_s8  }
  0x24   : > { %p685_p0 = scmp.lt.s32.totalorder %s533_s18, 4  ;;  %p686_p1 = scmp.ge.s32.totalorder %s533_s18, 1 }
  0x26   : > { %p187_p12 = pnand %p686_p1, %p685_p0 }
  0x27   : > { %s192_s26 = sand.u32 (!%p187_p12), 1, %s525_s16   ;;  %p687_p9 = scmp.ne.s32.totalorder (!%p187_p12), %s683_s24, 0 }
  0x28   : > { %190 = sbr.rel (%p187_p12) target bundleno = 392 (0x188), region = 32  ;;  %s417_s27 = sshll.u32 (!%p187_p12), %s192_s26, 2 }
  0x29   : > { %s193_s28 = scalar_lea.sflag (!%p187_p12), [#allocation3], %s192_s26  ;;  %s196_s29 = scalar_lea.vmem (!%p187_p12), [#allocation2], %s417_s27 }
  0x2d   : > { %516 = dma.done.wait (%p687_p9), %s193_s28, 64  }
  0x2e   : > { %518 = vsyncadd (%p687_p9), %s193_s28, 4294967232  ;;  %v536_v0 = vmov 0   ;;  %v269_v1 = vld [vmem:[%s679_s2] sm:$0xff]  ;;  %p225_p7 = scmp.lt.s32.totalorder %s581_s19, 2  ;;  %v255_v16 = vlaneseq  ;;  %s419_s8 = sshll.u32 %s581_s19, 7  ;;  %vm292_vm2 = vcmask 1040384  }
  0x2f   : > { %466 = vset.pattern.permute.xlu0 %v536_v0  ;;  %v234_v2 = vld [vmem:[%s196_s29] sm:$0xf]  ;;  %v285_v35 = vstv %s419_s8  ;;  %vm304_vm3 = vcmask 0  }
  0x30   : > { %272 = vperm.xlu0 %466, %v269_v1   ;;  %v235_v3 = vunpack.c.l.bf16 %v234_v2  ;;  %s649_s18 = scalar_select %p225_p7, %s581_s19, 2  ;;  %v256_v18 = vshrl.u32 %v255_v16, 7  ;;  %v283_v33 = vand.u32 127, %v255_v16 }
  0x32   : > { %v237_v4 = vrot.slane %v235_v3, 4  ;;  %s227_s6 = scalar_lea.vmem %s678_s1, %s649_s18  ;;  %v286_v39 = vadd.s32 %v285_v35, %v283_v33  ;;  %s230_s10 = scalar_lea.vmem %s680_s3, %s649_s18 }
  0x33   : > { %v418_v19 = vld [vmem:[%s227_s6] ss:$0 sm:$0xff]  ;;  %s233_s14 = scalar_lea.vmem %s681_s4, %s649_s18 }
  0x34   : > { %v238_v5 = vmax.f32 %v235_v3, %v237_v4  ;;  %vm261_vm0 = vcmp.eq.s32.totalorder %v256_v18, %v418_v19  ;;  %vm287_vm1 = vcmp.lt.s32.totalorder %v286_v39, 300 }
  0x35   : > { %v262_v22 = vsel %vm261_vm0, %v235_v3, 0.0 }
  0x36   : > { %v239_v6 = vrot.slane %v238_v5, 2  ;;  %v263_v23 = vrot.slane %v262_v22, 4 }
  0x38   : > { %v240_v7 = vmax.f32 %v238_v5, %v239_v6  ;;  %v264_v24 = vadd.f32 %v263_v23, %v262_v22 }
  0x3a   : > { %v241_v8 = vrot.slane %v240_v7, 1  ;;  %v265_v25 = vrot.slane %v264_v24, 2 }
  0x3c   : > { %v242_v9 = vmax.f32 %v240_v7, %v241_v8  ;;  %v266_v26 = vadd.f32 %v265_v25, %v264_v24 }
  0x3e   : > { %v243_v10 = vsub.f32 %v235_v3, %v242_v9  ;;  %v267_v30 = vrot.slane %v266_v26, 1 }
  0x40   : > { %v244_v11 = vmul.f32 1.442695, %v243_v10  ;;  %v268_v38 = vadd.f32 %v267_v30, %v266_v26 }
  0x42   : > { %467 = vpow2.f32 %v244_v11 }
  0x4f   : > { %v468_v12 = vpop.eup %467 }
  0x50   : > { %v246_v13 = vrot.slane %v468_v12, 4 }
  0x52   : > { %v247_v14 = vadd.f32 %v468_v12, %v246_v13 }
  0x54   : > { %v248_v15 = vrot.slane %v247_v14, 2 }
  0x56   : > { %v249_v17 = vadd.f32 %v248_v15, %v247_v14 }
  0x58   : > { %v250_v20 = vrot.slane %v249_v17, 1 }
  0x5a   : > { %v251_v21 = vadd.f32 %v250_v20, %v249_v17 }
  0x5c   : > { %469 = vlog2.f32 %v251_v21 }
  0x69   : > { %v470_v27 = vpop.eup %469 }
  0x6a   : > { %v253_v32 = vmul.f32 0.6931472, %v470_v27 }
  0x6c   : > { %v254_v37 = vadd.f32 %v253_v32, %v242_v9 }
  0x6e   : > { %v288_v42 = vsub.f32 %v254_v37, %v268_v38 }
  0xab   : > { %v273_v28 = vpop.permute.xlu0 %272 }
  0xac   : > { %v275_v29 = vsel %vm261_vm0, %v273_v28, 0.0 }
  0xad   : > { %v276_v31 = vrot.slane %v275_v29, 4 }
  0xaf   : > { %v277_v34 = vadd.f32 %v276_v31, %v275_v29 }
  0xb1   : > { %v278_v36 = vrot.slane %v277_v34, 2 }
  0xb3   : > { %v279_v40 = vadd.f32 %v278_v36, %v277_v34 }
  0xb5   : > { %v280_v41 = vrot.slane %v279_v40, 1 }
  0xb7   : > { %v281_v43 = vadd.f32 %v280_v41, %v279_v40 }
  0xb9   : > { %v291_v44 = vsel %vm287_vm1, %v281_v43, 0.0  ;;  %v289_v45 = vmul.f32 %v288_v42, %v281_v43 }
  0xba   : > { %v306_v46 = vsel %vm292_vm2, %v291_v44, 0.0 }
  0xbb   : > { %307 = vadd.xlane.f32.xlu1 %v306_v46  ;;  %v290_v47 = vsel %vm287_vm1, %v289_v45, 0.0 }
  0xbc   : > { %v293_v48 = vsel %vm292_vm2, %v290_v47, 0.0 }
  0xbd   : > { %294 = vadd.xlane.f32.xlu0 %v293_v48 }
 0x144   : > { %v308_v49 = vpop.xlane.xlu1 %307 }
 0x145   : > { %v309_v50 = vrot.slane %v308_v49, 4 }
 0x146   : > { %v295_v51 = vpop.xlane.xlu0 %294 }
 0x147   : > { %v310_v52 = vadd.f32 %v309_v50, %v308_v49  ;;  %v296_v53 = vrot.slane %v295_v51, 4 }
 0x149   : > { %v311_v54 = vrot.slane %v310_v52, 2  ;;  %v297_v55 = vadd.f32 %v296_v53, %v295_v51 }
 0x14b   : > { %v312_v56 = vadd.f32 %v311_v54, %v310_v52  ;;  %v298_v57 = vrot.slane %v297_v55, 2 }
 0x14d   : > { %v299_v58 = vadd.f32 %v298_v57, %v297_v55  ;;  %v313_v59 = vrot.slane %v312_v56, 1 }
 0x14f   : > { %v300_v60 = vrot.slane %v299_v58, 1  ;;  %v314_v62 = vadd.f32 %v313_v59, %v312_v56 }
 0x151   : > { %v301_v61 = vadd.f32 %v300_v60, %v299_v58 }
 0x153   : > { %422 = vpush %v301_v61 }
 0x154   : > { %424 = vpush %v314_v62 }
 0x184   : > { %s423_s11 = spop %422 }
 0x185   : > { %v303_v63 = vstv %s423_s11  ;;  %s425_s15 = spop %424 }
 0x186   : > { %305 = vst.msk [vmem:[%s230_s10] sm:$0x1] %vm304_vm3, %v303_v63  ;;  %v316_v0 = vstv %s425_s15 }
 0x187   : > { %317 = vst.msk [vmem:[%s233_s14] sm:$0x1] %vm304_vm3, %v316_v0 }
 0x188 PF: > { %p15_p8 = scmp.ge.s32.totalorder %s584_s20, 5   ;;  %s688_s15 = smov %s525_s16 }
 0x189   : > { %s689_s16 = smov %s529_s17  ;;  %s690_s17 = smov %s594_s23 }
 0x18a   : > { %s691_s18 = smov %s584_s20  ;;  %17 = sbr.rel (!%p15_p8) target bundleno = 3 (0x3), region = 87 }
 0x18f   :  { %347 = vsyncpa [#allocation3], 1 }
 0x190   :  { %349 = vsyncpa [#allocation3 + $0x1], 1 }

</bundles_post_ra>
